<compile_context>
chip_gen: v5e
topology: v5e:2x2
jax: 0.10.0
libtpu: 0.0.40
codegen_flags: <defaults>
</compile_context>

<pallas_src>
import jax
import jax.numpy as jnp
from jax.experimental import pallas as pl
from jax.experimental.pallas import tpu as pltpu

IN_F = 6        # true input features
HID = 256       # hidden width
OUT_F = 6       # true output features
IN_PAD = 8      # layer-1 contraction padded 6 -> 8 (zero-filled)
OUT_PAD = 128   # lane-dense output slab, sliced back to 6 in the wrapper


def _round_up(n, m):
    return ((n + m - 1) // m) * m


def _mlp_kernel(x_ref, w1_ref, b1_ref, w2_ref, b2_ref, w3_ref, b3_ref, o_ref):
    # x tile: (TB, 8) bf16.  Weights: bf16, VMEM-resident (constant index_map).
    # All dots accumulate in f32 on the MXU; bias adds / tanh run in f32 (VPU/EUP).
    x = x_ref[...]
    h1 = jnp.tanh(
        jnp.dot(x, w1_ref[...], preferred_element_type=jnp.float32) + b1_ref[...]
    )                                                                  # (TB, 256) f32
    h2 = jnp.tanh(
        jnp.dot(h1.astype(jnp.bfloat16), w2_ref[...],
                preferred_element_type=jnp.float32) + b2_ref[...]
    )                                                                  # (TB, 256) f32
    out = jnp.dot(h2.astype(jnp.bfloat16), w3_ref[...],
                  preferred_element_type=jnp.float32) + b3_ref[...]    # (TB, 128) f32
    o_ref[...] = out.astype(o_ref.dtype)


def policy_network_forward(x, params, *, block_rows=1024):
    """x: (B, 6) float32.  params: output of pack_params() (padded bf16 weights)."""
    B = x.shape[0]
    TB = _round_up(min(block_rows, max(B, 1)), 8)   # sublane-multiple batch tile
    B_pad = _round_up(B, TB)
    grid = (B_pad // TB,)

    # Pad batch rows and the 6->8 feature dim; cast the matmul operand to bf16.
    x_pad = jnp.pad(x, ((0, B_pad - B), (0, IN_PAD - IN_F))).astype(jnp.bfloat16)

    w1, b1, w2, b2, w3, b3 = (params[k] for k in ("w1", "b1", "w2", "b2", "w3", "b3"))

    # Weights / biases: same block every grid step -> DMA'd once, VMEM-resident.
    def resident(a):
        return pl.BlockSpec(a.shape, lambda i: (0, 0))

    flops = 2 * B_pad * (IN_PAD * HID + HID * HID + HID * OUT_PAD)
    transcendentals = 2 * B_pad * HID
    bytes_accessed = (
        x_pad.size * x_pad.dtype.itemsize
        + sum(int(p.size) * p.dtype.itemsize for p in (w1, b1, w2, b2, w3, b3))
        + B_pad * OUT_PAD * 4
    )

    out_padded = pl.pallas_call(
        _mlp_kernel,
        out_shape=jax.ShapeDtypeStruct((B_pad, OUT_PAD), jnp.float32),
        grid=grid,
        in_specs=[
            pl.BlockSpec((TB, IN_PAD), lambda i: (i, 0)),   # x tiles over the batch
            resident(w1), resident(b1),
            resident(w2), resident(b2),
            resident(w3), resident(b3),
        ],
        out_specs=pl.BlockSpec((TB, OUT_PAD), lambda i: (i, 0)),
        compiler_params=pltpu.CompilerParams(dimension_semantics=("parallel",)),
        cost_estimate=pl.CostEstimate(
            flops=flops, transcendentals=transcendentals, bytes_accessed=bytes_accessed
        ),
    )(x_pad, w1, b1, w2, b2, w3, b3)

    return out_padded[:B, :OUT_F]


def pack_params(w1, b1, w2, b2, w3, b3):
    """Pack (in,out)-layout f32 weights + biases into padded bf16 kernel params."""
    w1p = jnp.zeros((IN_PAD, HID), jnp.bfloat16).at[:IN_F, :].set(w1.astype(jnp.bfloat16))
    w2p = w2.astype(jnp.bfloat16)
    w3p = jnp.zeros((HID, OUT_PAD), jnp.bfloat16).at[:, :OUT_F].set(w3.astype(jnp.bfloat16))
    b3p = jnp.zeros((1, OUT_PAD), jnp.float32).at[:, :OUT_F].set(
        b3.reshape(1, -1).astype(jnp.float32))
    return {
        "w1": w1p, "b1": b1.reshape(1, -1).astype(jnp.float32),
        "w2": w2p, "b2": b2.reshape(1, -1).astype(jnp.float32),
        "w3": w3p, "b3": b3p,
    }


def init_raw_params(key):
    """PyTorch-default-like init, weights stored as (in_features, out_features) f32."""
    k1, k2, k3, k4, k5, k6 = jax.random.split(key, 6)

    def lin(kw, kb, fan_in, fan_out):
        bound = 1.0 / jnp.sqrt(fan_in)
        w = jax.random.uniform(kw, (fan_in, fan_out), jnp.float32, -bound, bound)
        b = jax.random.uniform(kb, (fan_out,), jnp.float32, -bound, bound)
        return w, b

    w1, b1 = lin(k1, k2, IN_F, HID)
    w2, b2 = lin(k3, k4, HID, HID)
    w3, b3 = lin(k5, k6, HID, OUT_F)
    return w1, b1, w2, b2, w3, b3


def _reference(x, packed):
    """Pure-JAX reference using the same bf16-rounded weights/operands (f32 math)."""
    w1 = packed["w1"].astype(jnp.float32)[:IN_F, :]
    w2 = packed["w2"].astype(jnp.float32)
    w3 = packed["w3"].astype(jnp.float32)[:, :OUT_F]
    b1, b2 = packed["b1"], packed["b2"]
    b3 = packed["b3"][:, :OUT_F]
    xb = x.astype(jnp.bfloat16).astype(jnp.float32)
    h1 = jnp.tanh(xb @ w1 + b1)
    h2 = jnp.tanh(h1.astype(jnp.bfloat16).astype(jnp.float32) @ w2 + b2)
    return h2.astype(jnp.bfloat16).astype(jnp.float32) @ w3 + b3


if __name__ == "__main__":
    key = jax.random.PRNGKey(0)
    kx, kp = jax.random.split(key)

    B = 8
    x = jax.random.normal(kx, (B, IN_F), jnp.float32)
    params = pack_params(*init_raw_params(kp))

    out = policy_network_forward(x, params)
    out = jax.block_until_ready(out)

    ref = _reference(x, params)
    assert out.shape == (B, OUT_F)
    assert jnp.allclose(out, ref, atol=1e-2, rtol=1e-2), "mismatch vs JAX reference"

    print("KERNEL_OK")
</pallas_src>

<mosaic_0001>
module attributes {stable_mosaic.version = 11 : i64} {
  func.func @_mlp_kernel(%arg0: i32, %arg1: memref<8x8xbf16, #tpu.memory_space<vmem>>, %arg2: memref<8x256xbf16, #tpu.memory_space<vmem>>, %arg3: memref<1x256xf32, #tpu.memory_space<vmem>>, %arg4: memref<256x256xbf16, #tpu.memory_space<vmem>>, %arg5: memref<1x256xf32, #tpu.memory_space<vmem>>, %arg6: memref<256x128xbf16, #tpu.memory_space<vmem>>, %arg7: memref<1x128xf32, #tpu.memory_space<vmem>>, %arg8: memref<8x128xf32, #tpu.memory_space<vmem>>) attributes {dimension_semantics = [#tpu.dimension_semantics<parallel>], iteration_bounds = array<i64: 1>, scalar_prefetch = 0 : i64, scratch_operands = 0 : i64, tpu.core_type = #tpu.core_type<tc>, window_params = [{transform_indices = @transform_0, window_bounds = array<i64: 8, 8>}, {pipeline_mode = #tpu.pipeline_mode<synchronous>, transform_indices = @transform_1, window_bounds = array<i64: 8, 256>}, {pipeline_mode = #tpu.pipeline_mode<synchronous>, transform_indices = @transform_2, window_bounds = array<i64: 1, 256>}, {pipeline_mode = #tpu.pipeline_mode<synchronous>, transform_indices = @transform_3, window_bounds = array<i64: 256, 256>}, {pipeline_mode = #tpu.pipeline_mode<synchronous>, transform_indices = @transform_4, window_bounds = array<i64: 1, 256>}, {pipeline_mode = #tpu.pipeline_mode<synchronous>, transform_indices = @transform_5, window_bounds = array<i64: 256, 128>}, {pipeline_mode = #tpu.pipeline_mode<synchronous>, transform_indices = @transform_6, window_bounds = array<i64: 1, 128>}, {transform_indices = @transform_7, window_bounds = array<i64: 8, 128>}]} {
    %c0 = arith.constant 0 : index
    %c0_0 = arith.constant 0 : index
    %0 = vector.load %arg1[%c0, %c0_0] : memref<8x8xbf16, #tpu.memory_space<vmem>>, vector<8x8xbf16>
    %c0_1 = arith.constant 0 : index
    %c0_2 = arith.constant 0 : index
    %1 = vector.load %arg2[%c0_1, %c0_2] : memref<8x256xbf16, #tpu.memory_space<vmem>>, vector<8x256xbf16>
    %cst = arith.constant dense<0.000000e+00> : vector<8x256xf32>
    %2 = tpu.matmul %0, %1, %cst {dimension_numbers = #tpu.dot_dimension_numbers<[1], [0], [0], [1], [0, 0, 1, 1], [], []>} : vector<8x8xbf16>, vector<8x256xbf16>, vector<8x256xf32> -> vector<8x256xf32>
    %c0_3 = arith.constant 0 : index
    %c0_4 = arith.constant 0 : index
    %3 = vector.load %arg3[%c0_3, %c0_4] : memref<1x256xf32, #tpu.memory_space<vmem>>, vector<1x256xf32>
    %4 = vector.broadcast %3 : vector<1x256xf32> to vector<8x256xf32>
    %5 = arith.addf %2, %4 : vector<8x256xf32>
    %6 = math.tanh %5 : vector<8x256xf32>
    %7 = arith.truncf %6 : vector<8x256xf32> to vector<8x256xbf16>
    %c0_5 = arith.constant 0 : index
    %c0_6 = arith.constant 0 : index
    %8 = vector.load %arg4[%c0_5, %c0_6] : memref<256x256xbf16, #tpu.memory_space<vmem>>, vector<256x256xbf16>
    %cst_7 = arith.constant dense<0.000000e+00> : vector<8x256xf32>
    %9 = tpu.matmul %7, %8, %cst_7 {dimension_numbers = #tpu.dot_dimension_numbers<[1], [0], [0], [1], [0, 0, 1, 1], [], []>} : vector<8x256xbf16>, vector<256x256xbf16>, vector<8x256xf32> -> vector<8x256xf32>
    %c0_8 = arith.constant 0 : index
    %c0_9 = arith.constant 0 : index
    %10 = vector.load %arg5[%c0_8, %c0_9] : memref<1x256xf32, #tpu.memory_space<vmem>>, vector<1x256xf32>
    %11 = vector.broadcast %10 : vector<1x256xf32> to vector<8x256xf32>
    %12 = arith.addf %9, %11 : vector<8x256xf32>
    %13 = math.tanh %12 : vector<8x256xf32>
    %14 = arith.truncf %13 : vector<8x256xf32> to vector<8x256xbf16>
    %c0_10 = arith.constant 0 : index
    %c0_11 = arith.constant 0 : index
    %15 = vector.load %arg6[%c0_10, %c0_11] : memref<256x128xbf16, #tpu.memory_space<vmem>>, vector<256x128xbf16>
    %cst_12 = arith.constant dense<0.000000e+00> : vector<8x128xf32>
    %16 = tpu.matmul %14, %15, %cst_12 {dimension_numbers = #tpu.dot_dimension_numbers<[1], [0], [0], [1], [0, 0, 1, 1], [], []>} : vector<8x256xbf16>, vector<256x128xbf16>, vector<8x128xf32> -> vector<8x128xf32>
    %c0_13 = arith.constant 0 : index
    %c0_14 = arith.constant 0 : index
    %17 = vector.load %arg7[%c0_13, %c0_14] : memref<1x128xf32, #tpu.memory_space<vmem>>, vector<1x128xf32>
    %18 = vector.broadcast %17 : vector<1x128xf32> to vector<8x128xf32>
    %19 = arith.addf %16, %18 : vector<8x128xf32>
    %c0_15 = arith.constant 0 : index
    %c0_16 = arith.constant 0 : index
    %20 = vector.load %arg8[%c0_15, %c0_16] : memref<8x128xf32, #tpu.memory_space<vmem>>, vector<8x128xf32>
    tpu.vector_store %arg8[%c0_15, %c0_16], %19 {strides = array<i32>} : memref<8x128xf32, #tpu.memory_space<vmem>>, vector<8x128xf32>,
    return
  }
  func.func @transform_0(%arg0: i32) -> (i32, i32) {
    %c0_i32 = arith.constant 0 : i32
    %c0_i32_0 = arith.constant 0 : i32
    return %arg0, %c0_i32 : i32, i32
  }
  func.func @transform_1(%arg0: i32) -> (i32, i32) {
    %c0_i32 = arith.constant 0 : i32
    %c0_i32_0 = arith.constant 0 : i32
    %c0_i32_1 = arith.constant 0 : i32
    return %c0_i32, %c0_i32_0 : i32, i32
  }
  func.func @transform_2(%arg0: i32) -> (i32, i32) {
    %c0_i32 = arith.constant 0 : i32
    %c0_i32_0 = arith.constant 0 : i32
    %c0_i32_1 = arith.constant 0 : i32
    return %c0_i32, %c0_i32_0 : i32, i32
  }
  func.func @transform_3(%arg0: i32) -> (i32, i32) {
    %c0_i32 = arith.constant 0 : i32
    %c0_i32_0 = arith.constant 0 : i32
    %c0_i32_1 = arith.constant 0 : i32
    return %c0_i32, %c0_i32_0 : i32, i32
  }
  func.func @transform_4(%arg0: i32) -> (i32, i32) {
    %c0_i32 = arith.constant 0 : i32
    %c0_i32_0 = arith.constant 0 : i32
    %c0_i32_1 = arith.constant 0 : i32
    return %c0_i32, %c0_i32_0 : i32, i32
  }
  func.func @transform_5(%arg0: i32) -> (i32, i32) {
    %c0_i32 = arith.constant 0 : i32
    %c0_i32_0 = arith.constant 0 : i32
    %c0_i32_1 = arith.constant 0 : i32
    return %c0_i32, %c0_i32_0 : i32, i32
  }
  func.func @transform_6(%arg0: i32) -> (i32, i32) {
    %c0_i32 = arith.constant 0 : i32
    %c0_i32_0 = arith.constant 0 : i32
    %c0_i32_1 = arith.constant 0 : i32
    return %c0_i32, %c0_i32_0 : i32, i32
  }
  func.func @transform_7(%arg0: i32) -> (i32, i32) {
    %c0_i32 = arith.constant 0 : i32
    %c0_i32_0 = arith.constant 0 : i32
    return %arg0, %c0_i32 : i32, i32
  }
}

</mosaic_0001>

<bundles_post_ra>
// kernel: tpu_custom_call.1
= control target key start
LH: loop header
LB: loop body
LE: loop exit
PB: predicated region body
PF: predicated region fallthrough
CT: control target
= control target key end

     0   :  { %12 = vsyncpa [#allocation3], 0  ;;  %s1077_s0 = inlined_call_operand.hbm [shape: bf16[8,8], index: 0, kind: input, shape index: {}]   ;;  %s1078_s1 = inlined_call_operand.hbm [shape: bf16[8,256], index: 1, kind: input, shape index: {}]   ;;  %s1079_s2 = inlined_call_operand.hbm [shape: f32[1,256], index: 2, kind: input, shape index: {}]   ;;  %s1080_s3 = inlined_call_operand.hbm [shape: bf16[256,256], index: 3, kind: input, shape index: {}]   ;;  %s1081_s4 = inlined_call_operand.vmem [shape: f32[1,256], index: 4, kind: input, shape index: {}]   ;;  %s1082_s5 = inlined_call_operand.hbm [shape: bf16[256,128], index: 5, kind: input, shape index: {}]   ;;  %s1083_s6 = inlined_call_operand.vmem [shape: f32[1,128], index: 6, kind: input, shape index: {}]   ;;  %s1084_s7 = inlined_call_operand.hbm [shape: f32[8,128], index: 7, kind: output, shape index: {}]  }
   0x1   :  { %13 = vsyncpa [#allocation6], 0 }
   0x2   :  { %14 = vsyncpa [#allocation9], 0  ;;  %s32_s26 = sshll.u32 %s1078_s1, 4  ;;  %s33_s26 = int_to_ptr.hbm [resolvable:$true] %s32_s26 }
   0x3   :  { %15 = vsyncpa [#allocation4], 0  ;;  %s999_s27 = smov [#allocation5]   ;;  %s53_s8 = sshll.u32 %s1080_s3, 4  ;;  %s54_s8 = int_to_ptr.hbm [resolvable:$true] %s53_s8 }
   0x4   :  { %s34_s28 = sshll.u32 %s999_s27, 4  ;;  %s1000_s9 = smov [#allocation8]   ;;  %s35_s28 = int_to_ptr.vmem [resolvable:$true] %s34_s28 }
   0x5   :  { %37 = dma.hbm_to_vmem [thread:$0]  %s33_s26, 128, %s35_s28, [#allocation6]  }
   0x6   :  { %s55_s10 = sshll.u32 %s1000_s9, 4  ;;  %s1001_s11 = smov 128   ;;  %s56_s10 = int_to_ptr.vmem [resolvable:$true] %s55_s10 }
   0x7   :  { %s1002_s12 = smov 8   ;;  %s21_s1 = sshll.u32 %s1077_s0, 4  ;;  %s22_s1 = int_to_ptr.hbm [resolvable:$true] %s21_s1 }
   0x8   :  { %61 = dma.hbm_to_vmem [thread:$0]  %s54_s8, 4096, %s56_s10, [#allocation9], %s1001_s11, %s1001_s11, %s1002_s12  }
   0x9   :  { %s1003_s15 = smov [#allocation2]   ;;  %s43_s3 = sshll.u32 %s1079_s2, 4  ;;  %s44_s3 = int_to_ptr.hbm [resolvable:$true] %s43_s3 }
   0xa   :  { %s23_s16 = sshll.u32 %s1003_s15, 4  ;;  %s1004_s19 = smov [#allocation7]   ;;  %s24_s16 = int_to_ptr.vmem [resolvable:$true] %s23_s16 }
   0xb   :  { %26 = dma.hbm_to_vmem [thread:$0]  %s22_s1, 64, %s24_s16, [#allocation3]  }
   0xc   :  { %s45_s20 = sshll.u32 %s1004_s19, 4  ;;  %s68_s23 = sshll.u32 %s1082_s5, 4  ;;  %s46_s20 = int_to_ptr.vmem [resolvable:$true] %s45_s20  ;;  %s69_s23 = int_to_ptr.hbm [resolvable:$true] %s68_s23 }
   0xd   :  { %48 = dma.hbm_to_vmem [thread:$0]  %s44_s3, 32, %s46_s20, [#allocation6]  }
   0xe   :  { %s1005_s0 = smov [#allocation10]   ;;  %s1006_s25 = smov 64  }
   0xf   :  { %s70_s24 = sshll.u32 %s1005_s0, 4  ;;  %s1007_s26 = smov 4   ;;  %s71_s24 = int_to_ptr.vmem [resolvable:$true] %s70_s24 }
  0x10   :  { %76 = dma.hbm_to_vmem [thread:$0]  %s69_s23, 2048, %s71_s24, [#allocation9], %s1006_s25, %s1006_s25, %s1007_s26  }
  0x11   :  { %991 = dma.done.wait [#allocation3], 64  }
  0x12   :  { %992 = vsyncadd [#allocation3], 4294967232 }
  0x13   :  { %993 = dma.done.wait [#allocation6], 160  }
  0x14   :  { %994 = vsyncadd [#allocation6], 4294967136 }
  0x15   :  { %995 = dma.done.wait [#allocation9], 6144  }
  0x16   :  { %996 = vsyncadd [#allocation9], 4294961152  ;;  %v101_v0 = vld [vmem:[#allocation5] sm:$0xff]  ;;  %vm117_vm0 = vcmask 1043456   ;;  %vm113_vm1 = vcmask 64512   ;;  %s1008_s28 = smov [#allocation11]  }
  0x17   :  { %v646_v1 = vld [vmem:[#allocation8 + $0x70] sm:$0xf]  ;;  %v109_v2 = vunpack.c.l.b16 %v101_v0  ;;  %v110_v3 = vunpack.c.h.b16 %v101_v0  ;;  %v795_v4 = vld [vmem:[#allocation8 + $0x74] sm:$0xf0]  ;;  %v794_v9 = vld [vmem:[#allocation8 + $0x74] sm:$0xf] }
  0x18   :  { %v710_v5 = vld [vmem:[#allocation8 + $0xf0] sm:$0xf]  ;;  %v811_v6 = vld [vmem:[#allocation8 + $0xf4] sm:$0xf0]  ;;  %v647_v7 = vor.u32 %v795_v4, %v646_v1  ;;  %v648_v10 = vld [vmem:[#allocation8 + $0x78] sm:$0xf0] }
  0x19   :  { %v711_v8 = vor.u32 %v811_v6, %v710_v5  ;;  %v810_v11 = vld [vmem:[#allocation8 + $0xf4] sm:$0xf]  ;;  %v111_v12 = vpack.c.b16 %v109_v2, %v109_v2  ;;  %v112_v13 = vpack.c.b16 %v110_v3, %v110_v3  ;;  %v651_v14 = vor.u32 %v794_v9, %v648_v10  ;;  %v712_v15 = vld [vmem:[#allocation8 + $0xf8] sm:$0xf0]  ;;  %v638_v16 = vld [vmem:[#allocation8 + $0x60] sm:$0xf] }
  0x1a   :  { %v793_v17 = vld [vmem:[#allocation8 + $0x64] sm:$0xf0]  ;;  %v100_v18 = vld [vmem:[#allocation2] sm:$0xf]  ;;  %352 = vmatpush.bf16.msra.mxu2 %v647_v7  ;;  %v715_v19 = vor.u32 %v810_v11, %v712_v15  ;;  %v702_v21 = vld [vmem:[#allocation8 + $0xe0] sm:$0xf] }
  0x1b   :  { %365 = vmatpush.bf16.msra.mxu3 %v711_v8  ;;  %v639_v20 = vor.u32 %v793_v17, %v638_v16  ;;  %v809_v22 = vld [vmem:[#allocation8 + $0xe4] sm:$0xf0]  ;;  %v792_v23 = vld [vmem:[#allocation8 + $0x64] sm:$0xf]  ;;  %v119_v24 = vsel %vm117_vm0, %v111_v12, 0  ;;  %v122_v25 = vsel %vm117_vm0, %v112_v13, 0 }
  0x1c   :  { %v703_v26 = vor.u32 %v809_v22, %v702_v21  ;;  %v640_v27 = vld [vmem:[#allocation8 + $0x68] sm:$0xf0]  ;;  %v808_v28 = vld [vmem:[#allocation8 + $0xe4] sm:$0xf]  ;;  %131 = vmatpush.bf16.msra.mxu0 %v119_v24  ;;  %144 = vmatpush.bf16.msra.mxu1 %v122_v25  ;;  %v630_v30 = vld [vmem:[#allocation8 + $0x50] sm:$0xf] }
  0x1d   :  { %v704_v29 = vld [vmem:[#allocation8 + $0xe8] sm:$0xf0]  ;;  %v791_v31 = vld [vmem:[#allocation8 + $0x54] sm:$0xf0]  ;;  %v643_v32 = vor.u32 %v792_v23, %v640_v27  ;;  %v694_v34 = vld [vmem:[#allocation8 + $0xd0] sm:$0xf] }
  0x1e   :  { %v707_v33 = vor.u32 %v808_v28, %v704_v29  ;;  %v807_v35 = vld [vmem:[#allocation8 + $0xd4] sm:$0xf0]  ;;  %v790_v36 = vld [vmem:[#allocation8 + $0x54] sm:$0xf]  ;;  %353 = vmatpush.bf16.msra.mxu2 %v639_v20  ;;  %v631_v37 = vor.u32 %v791_v31, %v630_v30  ;;  %v632_v39 = vld [vmem:[#allocation8 + $0x58] sm:$0xf0] }
  0x1f   :  { %366 = vmatpush.bf16.msra.mxu3 %v703_v26  ;;  %v695_v38 = vor.u32 %v807_v35, %v694_v34  ;;  %v806_v40 = vld [vmem:[#allocation8 + $0xd4] sm:$0xf]  ;;  %v696_v41 = vld [vmem:[#allocation8 + $0xd8] sm:$0xf0]  ;;  %586 = vmatmul.msk.bf16.vlgmr.msra.gmra.mxu0 %vm113_vm1, %v100_v18  ;;  %v622_v42 = vld [vmem:[#allocation8 + $0x40] sm:$0xf]  ;;  %v635_v46 = vor.u32 %v790_v36, %v632_v39 }
  0x20   :  { %378 = vmatpush.bf16.msrb.mxu0 %v651_v14  ;;  %391 = vmatpush.bf16.msrb.mxu1 %v715_v19  ;;  %v789_v43 = vld [vmem:[#allocation8 + $0x44] sm:$0xf0]  ;;  %v686_v44 = vld [vmem:[#allocation8 + $0xc0] sm:$0xf]  ;;  %v699_v47 = vor.u32 %v806_v40, %v696_v41  ;;  %v788_v48 = vld [vmem:[#allocation8 + $0x44] sm:$0xf] }
  0x21   :  { %587 = vmatmul.msk.bf16.vlgmr.msra.gmra.mxu1 %vm113_vm1, %v100_v18  ;;  %v805_v45 = vld [vmem:[#allocation8 + $0xc4] sm:$0xf0]  ;;  %v624_v49 = vld [vmem:[#allocation8 + $0x48] sm:$0xf0]  ;;  %v623_v50 = vor.u32 %v789_v43, %v622_v42  ;;  %v804_v52 = vld [vmem:[#allocation8 + $0xc4] sm:$0xf] }
  0x22   :  { %354 = vmatpush.bf16.msra.mxu2 %v631_v37  ;;  %v687_v51 = vor.u32 %v805_v45, %v686_v44  ;;  %v688_v53 = vld [vmem:[#allocation8 + $0xc8] sm:$0xf0]  ;;  %v614_v54 = vld [vmem:[#allocation8 + $0x30] sm:$0xf]  ;;  %v787_v55 = vld [vmem:[#allocation8 + $0x34] sm:$0xf0]  ;;  %v627_v58 = vor.u32 %v788_v48, %v624_v49 }
  0x23   :  { %367 = vmatpush.bf16.msra.mxu3 %v695_v38  ;;  %v678_v56 = vld [vmem:[#allocation8 + $0xb0] sm:$0xf]  ;;  %v803_v57 = vld [vmem:[#allocation8 + $0xb4] sm:$0xf0]  ;;  %v691_v59 = vor.u32 %v804_v52, %v688_v53  ;;  %v786_v60 = vld [vmem:[#allocation8 + $0x34] sm:$0xf]  ;;  %v615_v61 = vor.u32 %v787_v55, %v614_v54 }
  0x24   :  { %379 = vmatpush.bf16.msrb.mxu0 %v643_v32  ;;  %392 = vmatpush.bf16.msrb.mxu1 %v707_v33  ;;  %v679_v62 = vor.u32 %v803_v57, %v678_v56  ;;  %v616_v63 = vld [vmem:[#allocation8 + $0x38] sm:$0xf0]  ;;  %v802_v0 = vld [vmem:[#allocation8 + $0xb4] sm:$0xf]  ;;  %v606_v4 = vld [vmem:[#allocation8 + $0x20] sm:$0xf] }
  0x25   :  { %v680_v1 = vld [vmem:[#allocation8 + $0xb8] sm:$0xf0]  ;;  %v619_v2 = vor.u32 %v786_v60, %v616_v63  ;;  %v785_v5 = vld [vmem:[#allocation8 + $0x24] sm:$0xf0]  ;;  %v670_v7 = vld [vmem:[#allocation8 + $0xa0] sm:$0xf] }
  0x26   :  { %355 = vmatpush.bf16.msra.mxu2 %v623_v50  ;;  %v683_v3 = vor.u32 %v802_v0, %v680_v1  ;;  %v607_v6 = vor.u32 %v785_v5, %v606_v4  ;;  %v801_v8 = vld [vmem:[#allocation8 + $0xa4] sm:$0xf0]  ;;  %v784_v9 = vld [vmem:[#allocation8 + $0x24] sm:$0xf]  ;;  %v608_v11 = vld [vmem:[#allocation8 + $0x28] sm:$0xf0] }
  0x27   :  { %368 = vmatpush.bf16.msra.mxu3 %v687_v51  ;;  %v671_v10 = vor.u32 %v801_v8, %v670_v7  ;;  %v800_v12 = vld [vmem:[#allocation8 + $0xa4] sm:$0xf]  ;;  %v672_v13 = vld [vmem:[#allocation8 + $0xa8] sm:$0xf0]  ;;  %v611_v14 = vor.u32 %v784_v9, %v608_v11  ;;  %v598_v16 = vld [vmem:[#allocation8 + $0x10] sm:$0xf] }
  0x28   :  { %380 = vmatpush.bf16.msrb.mxu0 %v635_v46  ;;  %393 = vmatpush.bf16.msrb.mxu1 %v699_v47  ;;  %v675_v15 = vor.u32 %v800_v12, %v672_v13  ;;  %v783_v17 = vld [vmem:[#allocation8 + $0x14] sm:$0xf0]  ;;  %v662_v18 = vld [vmem:[#allocation8 + $0x90] sm:$0xf]  ;;  %v782_v21 = vld [vmem:[#allocation8 + $0x14] sm:$0xf] }
  0x29   :  { %v599_v19 = vor.u32 %v783_v17, %v598_v16  ;;  %v799_v20 = vld [vmem:[#allocation8 + $0x94] sm:$0xf0]  ;;  %v600_v22 = vld [vmem:[#allocation8 + $0x18] sm:$0xf0]  ;;  %v798_v25 = vld [vmem:[#allocation8 + $0x94] sm:$0xf] }
  0x2a   :  { %356 = vmatpush.bf16.msra.mxu2 %v615_v61  ;;  %v663_v23 = vor.u32 %v799_v20, %v662_v18  ;;  %v603_v24 = vor.u32 %v782_v21, %v600_v22  ;;  %v664_v26 = vld [vmem:[#allocation8 + $0x98] sm:$0xf0]  ;;  %v590_v28 = vld [vmem:[#allocation8] sm:$0xf]  ;;  %v781_v29 = vld [vmem:[#allocation8 + $0x4] sm:$0xf0] }
  0x2b   :  { %369 = vmatpush.bf16.msra.mxu3 %v679_v62  ;;  %v667_v27 = vor.u32 %v798_v25, %v664_v26  ;;  %v654_v30 = vld [vmem:[#allocation8 + $0x80] sm:$0xf]  ;;  %v591_v31 = vor.u32 %v781_v29, %v590_v28  ;;  %v797_v32 = vld [vmem:[#allocation8 + $0x84] sm:$0xf0]  ;;  %v780_v33 = vld [vmem:[#allocation8 + $0x4] sm:$0xf] }
  0x2c   :  { %381 = vmatpush.bf16.msrb.mxu0 %v627_v58  ;;  %394 = vmatpush.bf16.msrb.mxu1 %v691_v59  ;;  %v592_v34 = vld [vmem:[#allocation8 + $0x8] sm:$0xf0]  ;;  %v655_v35 = vor.u32 %v797_v32, %v654_v30  ;;  %v796_v37 = vld [vmem:[#allocation8 + $0x84] sm:$0xf]  ;;  %v827_v40 = vld [vmem:[#allocation10 + $0x78] sm:$0xff]  ;;  %s572_s29 = sshll.u32 %s1008_s28, 4  ;;  %s573_s29 = int_to_ptr.vmem [resolvable:$true] %s572_s29 }
  0x2d   :  { %v595_v36 = vor.u32 %v780_v33, %v592_v34  ;;  %v656_v38 = vld [vmem:[#allocation8 + $0x88] sm:$0xf0]  ;;  %v819_v41 = vld [vmem:[#allocation10 + $0x38] sm:$0xff]  ;;  %v826_v42 = vld [vmem:[#allocation10 + $0x70] sm:$0xff]  ;;  %s574_s9 = sshll.u32 %s1084_s7, 4  ;;  %s575_s9 = int_to_ptr.hbm [resolvable:$true] %s574_s9 }
  0x2e   :  { %357 = vmatpush.bf16.msra.mxu2 %v607_v6  ;;  %v659_v39 = vor.u32 %v796_v37, %v656_v38  ;;  %v818_v43 = vld [vmem:[#allocation10 + $0x30] sm:$0xff]  ;;  %v825_v44 = vld [vmem:[#allocation10 + $0x68] sm:$0xff]  ;;  %v824_v46 = vld [vmem:[#allocation10 + $0x60] sm:$0xff] }
  0x2f   :  { %370 = vmatpush.bf16.msra.mxu3 %v671_v10  ;;  %v817_v45 = vld [vmem:[#allocation10 + $0x28] sm:$0xff]  ;;  %v102_v47 = vld [vmem:[#allocation7] sm:$0x3]  ;;  %v816_v61 = vld [vmem:[#allocation10 + $0x20] sm:$0xff] }
  0x30   :  { %382 = vmatpush.bf16.msrb.mxu0 %v619_v2  ;;  %395 = vmatpush.bf16.msrb.mxu1 %v683_v3  ;;  %v823_v48 = vld [vmem:[#allocation10 + $0x58] sm:$0xff]  ;;  %v104_v49 = vperm.slane %v102_v47, 0  ;;  %v105_v50 = vperm.slane %v102_v47, 1  ;;  %v822_v62 = vld [vmem:[#allocation10 + $0x50] sm:$0xff]  ;;  %v821_v0 = vld [vmem:[#allocation10 + $0x48] sm:$0xff] }
  0x31   :  { %v815_v63 = vld [vmem:[#allocation10 + $0x18] sm:$0xff]  ;;  %v814_v1 = vld [vmem:[#allocation10 + $0x10] sm:$0xff]  ;;  %v820_v2 = vld [vmem:[#allocation10 + $0x40] sm:$0xff] }
  0x32   :  { %358 = vmatpush.bf16.msra.mxu2 %v599_v19  ;;  %v813_v3 = vld [vmem:[#allocation10 + $0x8] sm:$0xff]  ;;  %v812_v4 = vld [vmem:[#allocation10] sm:$0xff]  ;;  %v186_v5 = vld [vmem:[%s1081_s4] sm:$0x3] }
  0x33   :  { %371 = vmatpush.bf16.msra.mxu3 %v663_v23  ;;  %v189_v6 = vperm.slane %v186_v5, 1  ;;  %v188_v11 = vperm.slane %v186_v5, 0  ;;  %v838_v25 = vld [vmem:[%s1083_s6] ss:$0 sm:$0xff] }
  0x34   :  { %383 = vmatpush.bf16.msrb.mxu0 %v611_v14  ;;  %396 = vmatpush.bf16.msrb.mxu1 %v675_v15 }
  0x36   :  { %359 = vmatpush.bf16.msra.mxu2 %v591_v31 }
  0x37   :  { %372 = vmatpush.bf16.msra.mxu3 %v655_v35 }
  0x38   :  { %384 = vmatpush.bf16.msrb.mxu0 %v603_v24  ;;  %397 = vmatpush.bf16.msrb.mxu1 %v667_v27 }
  0x3a   :  { %540 = vmatpush.bf16.msrb.mxu2 %v819_v41 }
  0x3b   :  { %553 = vmatpush.bf16.msrb.mxu3 %v827_v40 }
  0x3c   :  { %385 = vmatpush.bf16.msrb.mxu0 %v595_v36  ;;  %398 = vmatpush.bf16.msrb.mxu1 %v659_v39 }
  0x3e   :  { %541 = vmatpush.bf16.msrb.mxu2 %v818_v43 }
  0x3f   :  { %554 = vmatpush.bf16.msrb.mxu3 %v826_v42 }
  0x42   :  { %542 = vmatpush.bf16.msrb.mxu2 %v817_v45 }
  0x43   :  { %555 = vmatpush.bf16.msrb.mxu3 %v825_v44 }
  0x46   :  { %543 = vmatpush.bf16.msrb.mxu2 %v816_v61 }
  0x47   :  { %556 = vmatpush.bf16.msrb.mxu3 %v824_v46 }
  0x4a   :  { %544 = vmatpush.bf16.msrb.mxu2 %v815_v63 }
  0x4b   :  { %557 = vmatpush.bf16.msrb.mxu3 %v823_v48 }
  0x4e   :  { %545 = vmatpush.bf16.msrb.mxu2 %v814_v1 }
  0x4f   :  { %558 = vmatpush.bf16.msrb.mxu3 %v822_v62 }
  0x52   :  { %546 = vmatpush.bf16.msrb.mxu2 %v813_v3 }
  0x53   :  { %559 = vmatpush.bf16.msrb.mxu3 %v821_v0 }
  0x56   :  { %547 = vmatpush.bf16.msrb.mxu2 %v812_v4 }
  0x57   :  { %560 = vmatpush.bf16.msrb.mxu3 %v820_v2 }
  0x9c   :  { %v133_v51 = vpop.f32.mrf.mxu0 }
  0x9d   :  { %v134_v53 = vadd.f32 %v133_v51, %v104_v49 }
  0x9e   :  { %v146_v52 = vpop.f32.mrf.mxu1 }
  0x9f   :  { %v147_v54 = vadd.f32 %v146_v52, %v105_v50  ;;  %839 = vtanh.f32 %v134_v53 }
  0xa1   :  { %841 = vtanh.f32 %v147_v54 }
  0xa4   :  { %v135_v55 = vpop.f32.mrf.mxu0 }
  0xa5   :  { %v840_v57 = vpop.eup %839 }
  0xa6   :  { %v148_v56 = vpop.f32.mrf.mxu1  ;;  %v152_v59 = vpack.c.bf16 %v840_v57, %v840_v57 }
  0xa7   :  { %v842_v58 = vpop.eup %841 }
  0xa8   :  { %v153_v60 = vpack.c.bf16 %v842_v58, %v842_v58  ;;  %360 = vmatmul.bf16.vlgmr.msra.gmra.mxu2 %v152_v59  ;;  %386 = vmatmul.bf16.vlgmr.msrb.gmra.mxu0 %v152_v59 }
  0xaa   :  { %373 = vmatmul.bf16.vlgmr.msra.gmra.mxu3 %v153_v60  ;;  %399 = vmatmul.bf16.vlgmr.msrb.gmra.mxu1 %v153_v60 }
 0x125   :  { %v387_v7 = vpop.f32.mrf.mxu0 }
 0x126   :  { %v388_v8 = vadd.f32 %v387_v7, %v189_v6 }
 0x127   :  { %v400_v9 = vpop.f32.mrf.mxu1 }
 0x128   :  { %v401_v10 = vadd.f32 %v400_v9, %v388_v8 }
 0x12a   :  { %843 = vtanh.f32 %v401_v10 }
 0x12b   :  { %v361_v12 = vpop.f32.mrf.mxu2 }
 0x12c   :  { %v362_v13 = vadd.f32 %v361_v12, %v188_v11 }
 0x12d   :  { %v374_v14 = vpop.f32.mrf.mxu3  ;;  %v389_v15 = vpop.f32.mrf.mxu0 }
 0x12e   :  { %v375_v16 = vadd.f32 %v374_v14, %v362_v13 }
 0x12f   :  { %v402_v17 = vpop.f32.mrf.mxu1 }
 0x130   :  { %v844_v18 = vpop.eup %843  ;;  %845 = vtanh.f32 %v375_v16 }
 0x131   :  { %v407_v19 = vpack.c.bf16 %v844_v18, %v844_v18 }
 0x133   :  { %v363_v20 = vpop.f32.mrf.mxu2  ;;  %561 = vmatmul.bf16.vlgmr.msrb.gmra.mxu3 %v407_v19 }
 0x135   :  { %v376_v21 = vpop.f32.mrf.mxu3 }
 0x136   :  { %v846_v22 = vpop.eup %845 }
 0x137   :  { %v406_v23 = vpack.c.bf16 %v846_v22, %v846_v22 }
 0x139   :  { %548 = vmatmul.bf16.vlgmr.msrb.gmra.mxu2 %v406_v23 }
 0x1b6   :  { %v562_v24 = vpop.f32.mrf.mxu3 }
 0x1bc   :  { %v549_v26 = vpop.f32.mrf.mxu2 }
 0x1bd   :  { %v550_v27 = vadd.f32 %v838_v25, %v549_v26 }
 0x1be   :  { %v564_v28 = vpop.f32.mrf.mxu3 }
 0x1bf   :  { %v563_v29 = vadd.f32 %v562_v24, %v550_v27 }
 0x1c1   :  { %566 = vst [vmem:[#allocation11] sm:$0xff] %v563_v29 }
 0x1c2   :  { %577 = dma.vmem_to_hbm [thread:$0]  %s573_s29, 128, %s575_s9, [#allocation4]  }
 0x1c4   :  { %v551_v30 = vpop.f32.mrf.mxu2 }
 0x1c5   :  { %997 = dma.done.wait [#allocation4], 128  }
 0x1c6   :  { %998 = vsyncadd [#allocation4], 4294967168 }
 0x1c7   :  { %582 = vsyncpa [#allocation3], 1 }
 0x1c8   :  { %583 = vsyncpa [#allocation6], 1 }
 0x1c9   :  { %584 = vsyncpa [#allocation9], 1 }
 0x1ca   :  { %585 = vsyncpa [#allocation4], 1 }

</bundles_post_ra>
